<compile_context>
chip_gen: v5e
topology: v5e:2x2
jax: 0.10.0
libtpu: 0.0.40
codegen_flags: <defaults>
</compile_context>

<pallas_src>
import math

import jax
import jax.numpy as jnp
from jax import lax
from jax.experimental import pallas as pl
from jax.experimental.pallas import tpu as pltpu


def _round_up(x, m):
    return ((x + m - 1) // m) * m


def make_rnn_block_kernel(hidden_size, t_blk, seq_len):
    """Kernel over grid (batch_block, time_block); each step runs t_blk RNN steps."""

    def kernel(x_ref, h0_ref, wx_ref, wh_ref, b_ref,
               out_ref, hN_ref, h_scr, xw_scr):
        # x_ref  : (T_BLK, B_BLK, I)   inputs for this (batch block, time block)
        # h0_ref : (B_BLK, H)          initial hidden for this batch block
        # wx_ref : (I, H+O)            fused weight, input rows  (single-buffered)
        # wh_ref : (H, H+O)            fused weight, hidden rows (single-buffered)
        # b_ref  : (1, H+O)            fused bias                (single-buffered)
        # out_ref: (T_BLK, B_BLK, O)   per-step log-softmax (one block writeback)
        # hN_ref : (B_BLK, H)          hidden after the last *real* timestep
        # h_scr  : (B_BLK, H)          hidden carried across the time-block axis
        # xw_scr : (T_BLK, B_BLK, H+O) hoisted input projection x @ w_x + bias
        tb = pl.program_id(1)
        t_sz, b_blk, in_sz = x_ref.shape
        ho = wx_ref.shape[1]

        @pl.when(tb == 0)
        def _():
            h_scr[...] = h0_ref[...]

        # ---- Hoisted, time-batched input projection: one large MXU GEMM ----
        x2d = x_ref[...].reshape(t_sz * b_blk, in_sz)
        xw = jnp.dot(x2d, wx_ref[...], preferred_element_type=jnp.float32)
        xw = xw + b_ref[...]                      # bias folded out of the loop
        xw_scr[...] = xw.reshape(t_sz, b_blk, ho)

        wh = wh_ref[...]

        # ---- Serial recurrence over the T_BLK steps of this block -----------
        def step(t, h):
            y = jnp.dot(h, wh, preferred_element_type=jnp.float32) + xw_scr[t]
            new_h = y[:, :hidden_size]
            logits = y[:, hidden_size:]

            # Numerically stable log-softmax over the last dim (EUP/XLU work).
            m = jnp.max(logits, axis=-1, keepdims=True)
            shifted = logits - m
            lse = jnp.log(jnp.sum(jnp.exp(shifted), axis=-1, keepdims=True))
            out_ref[t] = (shifted - lse).astype(out_ref.dtype)

            # Capture hidden after the last *real* step (robust to time padding).
            @pl.when(tb * t_blk + t == seq_len - 1)
            def _():
                hN_ref[...] = new_h.astype(hN_ref.dtype)

            return new_h

        h_scr[...] = lax.fori_loop(0, t_blk, step, h_scr[...], unroll=True)

    return kernel


def rnn_forward_sequence(inputs, hidden0, params, *, t_blk=32, b_blk=128):
    """Run T RNN steps in one pallas_call.

    inputs : (T, B, I) float32
    hidden0: (B, H)    float32
    returns: (log-softmax outputs (T, B, O), hidden_T (B, H))
    """
    w_x, w_h, bias = params
    T, B, I = inputs.shape
    H = w_h.shape[0]
    HO = w_x.shape[1]
    O = HO - H

    # Batch blocking: multiple of the f32 sublane tile (8), grown toward the
    # MXU width (128) when the real batch allows.  On v7x, nb >= 2 is what lets
    # the second TensorCore participate via the "parallel" axis.
    b_blk = max(8, min(b_blk, _round_up(B, 8)))
    B_pad = _round_up(B, b_blk)
    nb = B_pad // b_blk

    # Time blocking: amortizes per-grid-step overhead and per-step DMAs.
    t_blk = max(1, min(t_blk, T))
    T_pad = _round_up(T, t_blk)
    nt = T_pad // t_blk

    if B_pad != B or T_pad != T:
        inputs = jnp.pad(inputs, ((0, T_pad - T), (0, B_pad - B), (0, 0)))
    if B_pad != B:
        hidden0 = jnp.pad(hidden0, ((0, B_pad - B), (0, 0)))

    kernel = make_rnn_block_kernel(H, t_blk, T)

    out_shapes = (
        jax.ShapeDtypeStruct((T_pad, B_pad, O), jnp.float32),
        jax.ShapeDtypeStruct((B_pad, H), jnp.float32),
    )

    # Weights / bias never change across the grid -> single-buffer them so they
    # occupy 1x (not 2x) their size in VMEM.
    resident = dict(pipeline_mode=pl.Buffered(1))

    grid_spec = pltpu.PrefetchScalarGridSpec(
        num_scalar_prefetch=0,
        grid=(nb, nt),
        in_specs=[
            pl.BlockSpec((t_blk, b_blk, I), lambda bb, tb: (tb, bb, 0)),
            pl.BlockSpec((b_blk, H), lambda bb, tb: (bb, 0)),
            pl.BlockSpec((I, HO), lambda bb, tb: (0, 0), **resident),
            pl.BlockSpec((H, HO), lambda bb, tb: (0, 0), **resident),
            pl.BlockSpec((1, HO), lambda bb, tb: (0, 0), **resident),
        ],
        out_specs=(
            pl.BlockSpec((t_blk, b_blk, O), lambda bb, tb: (tb, bb, 0)),
            pl.BlockSpec((b_blk, H), lambda bb, tb: (bb, 0)),
        ),
        scratch_shapes=[
            pltpu.VMEM((b_blk, H), jnp.float32),          # carried hidden state
            pltpu.VMEM((t_blk, b_blk, HO), jnp.float32),  # hoisted input projection
        ],
    )

    cost = pl.CostEstimate(
        flops=2 * T_pad * B_pad * (I + H) * HO,
        transcendentals=T_pad * B_pad * (O + 1),
        bytes_accessed=4 * (T_pad * B_pad * (I + O) + 2 * B_pad * H
                            + (I + H + 1) * HO),
    )

    outputs, hidden_T = pl.pallas_call(
        kernel,
        out_shape=out_shapes,
        grid_spec=grid_spec,
        # hidden0 (input 1) aliases hidden_T (output 1): saves one HBM buffer.
        input_output_aliases={1: 1},
        cost_estimate=cost,
        compiler_params=pltpu.CompilerParams(
            # Batch blocks are independent; time-block axis is the recurrence.
            dimension_semantics=("parallel", "arbitrary"),
            # Explicit scoped-VMEM budget (v5e default is only 16 MiB).
            vmem_limit_bytes=32 * 1024 * 1024,
        ),
    )(inputs, hidden0, w_x, w_h, bias)

    return outputs[:T, :B], hidden_T[:B]


def rnn_forward(input1, hidden1, params):
    """Mirrors RNN.forward (single step): returns (log_softmax_output, new_hidden)."""
    outputs, hidden = rnn_forward_sequence(input1[None], hidden1, params)
    return outputs[0], hidden


def init_hidden(hidden_size, batch=1):
    return jnp.zeros((batch, hidden_size), jnp.float32)


def init_params(key, input_size, hidden_size, output_size):
    """PyTorch-style uniform init U(-1/sqrt(fan_in), 1/sqrt(fan_in)).

    Weights are stored transposed (in_features, out_features); the i2h / i2o
    heads are fused along the output axis and split along the input axis into
    (w_x, w_h, bias) so the kernel needs neither a concat nor two GEMM heads.
    For large hidden sizes on v7x, cast w_x/w_h to bfloat16 (f32 accumulate).
    """
    fan_in = input_size + hidden_size
    bound = 1.0 / math.sqrt(fan_in)
    k1, k2, k3, k4 = jax.random.split(key, 4)
    w_i2h = jax.random.uniform(k1, (fan_in, hidden_size), jnp.float32, -bound, bound)
    b_i2h = jax.random.uniform(k2, (1, hidden_size), jnp.float32, -bound, bound)
    w_i2o = jax.random.uniform(k3, (fan_in, output_size), jnp.float32, -bound, bound)
    b_i2o = jax.random.uniform(k4, (1, output_size), jnp.float32, -bound, bound)

    w = jnp.concatenate([w_i2h, w_i2o], axis=1)      # (I+H, H+O) fused heads
    bias = jnp.concatenate([b_i2h, b_i2o], axis=1)   # (1, H+O)
    w_x = w[:input_size]                             # (I, H+O)
    w_h = w[input_size:]                             # (H, H+O)
    return (w_x, w_h, bias)


if __name__ == "__main__":
    input_size, hidden_size, output_size = 16, 32, 8
    batch, seq_len = 2, 8

    key = jax.random.PRNGKey(0)
    kp, kx, kh = jax.random.split(key, 3)

    params = init_params(kp, input_size, hidden_size, output_size)
    w_x, w_h, bias = params

    inputs = jax.random.normal(kx, (seq_len, batch, input_size), jnp.float32)
    hidden0 = jax.random.normal(kh, (batch, hidden_size), jnp.float32)

    # --- Pallas: whole sequence in one kernel call ---------------------------
    outputs, hidden_T = rnn_forward_sequence(inputs, hidden0, params)
    jax.block_until_ready((outputs, hidden_T))

    # --- Pallas: single step (matches the PyTorch module's forward) ----------
    out_step, hid_step = rnn_forward(inputs[0], hidden0, params)
    jax.block_until_ready((out_step, hid_step))

    # --- Pure-JAX reference ---------------------------------------------------
    w_full = jnp.concatenate([w_x, w_h], axis=0)     # (I+H, H+O)

    def ref_step(h, x):
        combined = jnp.concatenate([x, h], axis=1)
        y = combined @ w_full + bias
        new_h = y[:, :hidden_size]
        out = jax.nn.log_softmax(y[:, hidden_size:], axis=-1)
        return new_h, out

    ref_hidden_T, ref_outputs = jax.lax.scan(ref_step, hidden0, inputs)

    assert outputs.shape == (seq_len, batch, output_size)
    assert hidden_T.shape == (batch, hidden_size)
    assert jnp.allclose(outputs, ref_outputs, atol=2e-4), "sequence output mismatch"
    assert jnp.allclose(hidden_T, ref_hidden_T, atol=2e-4), "final hidden mismatch"

    ref_h1, ref_o1 = ref_step(hidden0, inputs[0])
    assert jnp.allclose(out_step, ref_o1, atol=2e-4), "single-step output mismatch"
    assert jnp.allclose(hid_step, ref_h1, atol=2e-4), "single-step hidden mismatch"

    print("KERNEL_OK")
</pallas_src>

<mosaic_0001>
module attributes {stable_mosaic.version = 11 : i64} {
  func.func @kernel(%arg0: i32, %arg1: i32, %arg2: memref<8x8x16xf32, #tpu.memory_space<vmem>>, %arg3: memref<8x32xf32, #tpu.memory_space<vmem>>, %arg4: memref<16x40xf32, #tpu.memory_space<vmem>>, %arg5: memref<32x40xf32, #tpu.memory_space<vmem>>, %arg6: memref<1x40xf32, #tpu.memory_space<vmem>>, %arg7: memref<8x8x8xf32, #tpu.memory_space<vmem>>, %arg8: memref<8x32xf32, #tpu.memory_space<vmem>>, %arg9: memref<8x32xf32, #tpu.memory_space<vmem>>, %arg10: memref<8x8x40xf32, #tpu.memory_space<vmem>>) attributes {dimension_semantics = [#tpu.dimension_semantics<parallel>, #tpu.dimension_semantics<arbitrary>], iteration_bounds = array<i64: 1, 1>, scalar_prefetch = 0 : i64, scratch_operands = 2 : i64, tpu.core_type = #tpu.core_type<tc>, window_params = [{transform_indices = @transform_0, window_bounds = array<i64: 8, 8, 16>}, {transform_indices = @transform_1, window_bounds = array<i64: 8, 32>}, {pipeline_mode = #tpu.pipeline_mode<synchronous>, transform_indices = @transform_2, window_bounds = array<i64: 16, 40>}, {pipeline_mode = #tpu.pipeline_mode<synchronous>, transform_indices = @transform_3, window_bounds = array<i64: 32, 40>}, {pipeline_mode = #tpu.pipeline_mode<synchronous>, transform_indices = @transform_4, window_bounds = array<i64: 1, 40>}, {transform_indices = @transform_5, window_bounds = array<i64: 8, 8, 8>}, {transform_indices = @transform_6, window_bounds = array<i64: 8, 32>}]} {
    %c0_i32 = arith.constant 0 : i32
    %0 = arith.cmpi eq, %arg1, %c0_i32 : i32
    %1 = arith.extui %0 : i1 to i32
    %c0_i32_0 = arith.constant 0 : i32
    %2 = arith.cmpi ne, %1, %c0_i32_0 : i32
    scf.if %2 {
      %c0_97 = arith.constant 0 : index
      %c0_98 = arith.constant 0 : index
      %223 = vector.load %arg3[%c0_97, %c0_98] : memref<8x32xf32, #tpu.memory_space<vmem>>, vector<8x32xf32>
      %c0_99 = arith.constant 0 : index
      %c0_100 = arith.constant 0 : index
      %224 = vector.load %arg9[%c0_99, %c0_100] : memref<8x32xf32, #tpu.memory_space<vmem>>, vector<8x32xf32>
      tpu.vector_store %arg9[%c0_99, %c0_100], %223 {strides = array<i32>} : memref<8x32xf32, #tpu.memory_space<vmem>>, vector<8x32xf32>,
    } else {
    }
    %c0 = arith.constant 0 : index
    %c0_1 = arith.constant 0 : index
    %c0_2 = arith.constant 0 : index
    %3 = vector.load %arg2[%c0, %c0_1, %c0_2] : memref<8x8x16xf32, #tpu.memory_space<vmem>>, vector<8x8x16xf32>
    %4 = vector.shape_cast %3 : vector<8x8x16xf32> to vector<64x16xf32>
    %c0_3 = arith.constant 0 : index
    %c0_4 = arith.constant 0 : index
    %5 = vector.load %arg4[%c0_3, %c0_4] : memref<16x40xf32, #tpu.memory_space<vmem>>, vector<16x40xf32>
    %cst = arith.constant dense<0.000000e+00> : vector<64x40xf32>
    %6 = tpu.matmul %4, %5, %cst {dimension_numbers = #tpu.dot_dimension_numbers<[1], [0], [0], [1], [0, 0, 1, 1], [], []>} : vector<64x16xf32>, vector<16x40xf32>, vector<64x40xf32> -> vector<64x40xf32>
    %c0_5 = arith.constant 0 : index
    %c0_6 = arith.constant 0 : index
    %7 = vector.load %arg6[%c0_5, %c0_6] : memref<1x40xf32, #tpu.memory_space<vmem>>, vector<1x40xf32>
    %8 = vector.broadcast %7 : vector<1x40xf32> to vector<64x40xf32>
    %9 = arith.addf %6, %8 : vector<64x40xf32>
    %10 = vector.shape_cast %9 : vector<64x40xf32> to vector<8x8x40xf32>
    %c0_7 = arith.constant 0 : index
    %c0_8 = arith.constant 0 : index
    %c0_9 = arith.constant 0 : index
    %11 = vector.load %arg10[%c0_7, %c0_8, %c0_9] : memref<8x8x40xf32, #tpu.memory_space<vmem>>, vector<8x8x40xf32>
    tpu.vector_store %arg10[%c0_7, %c0_8, %c0_9], %10 {strides = array<i32>} : memref<8x8x40xf32, #tpu.memory_space<vmem>>, vector<8x8x40xf32>,
    %c0_10 = arith.constant 0 : index
    %c0_11 = arith.constant 0 : index
    %12 = vector.load %arg5[%c0_10, %c0_11] : memref<32x40xf32, #tpu.memory_space<vmem>>, vector<32x40xf32>
    %c0_12 = arith.constant 0 : index
    %c0_13 = arith.constant 0 : index
    %13 = vector.load %arg9[%c0_12, %c0_13] : memref<8x32xf32, #tpu.memory_space<vmem>>, vector<8x32xf32>
    %c0_i32_14 = arith.constant 0 : i32
    %cst_15 = arith.constant dense<0.000000e+00> : vector<8x40xf32>
    %14 = tpu.matmul %13, %12, %cst_15 {dimension_numbers = #tpu.dot_dimension_numbers<[1], [0], [0], [1], [0, 0, 1, 1], [], []>} : vector<8x32xf32>, vector<32x40xf32>, vector<8x40xf32> -> vector<8x40xf32>
    %15 = arith.index_cast %c0_i32_14 : i32 to index
    %c0_16 = arith.constant 0 : index
    %c0_17 = arith.constant 0 : index
    %16 = vector.load %arg10[%15, %c0_16, %c0_17] : memref<8x8x40xf32, #tpu.memory_space<vmem>>, vector<1x8x40xf32>
    %17 = vector.shape_cast %16 : vector<1x8x40xf32> to vector<8x40xf32>
    %18 = arith.addf %14, %17 : vector<8x40xf32>
    %19 = vector.extract_strided_slice %18 {offsets = [0, 0], sizes = [8, 32], strides = [1, 1]} : vector<8x40xf32> to vector<8x32xf32>
    %20 = vector.extract_strided_slice %18 {offsets = [0, 32], sizes = [8, 8], strides = [1, 1]} : vector<8x40xf32> to vector<8x8xf32>
    %cst_18 = arith.constant dense<0xFF800000> : vector<8xf32>
    %21 = vector.multi_reduction <maximumf>, %20, %cst_18 [1] : vector<8x8xf32> to vector<8xf32>
    %22 = vector.shape_cast %21 : vector<8xf32> to vector<8x1xf32>
    %23 = vector.broadcast %22 : vector<8x1xf32> to vector<8x8xf32>
    %24 = arith.subf %20, %23 : vector<8x8xf32>
    %25 = math.exp %24 : vector<8x8xf32>
    %cst_19 = arith.constant dense<0.000000e+00> : vector<8xf32>
    %26 = vector.multi_reduction <add>, %25, %cst_19 [1] : vector<8x8xf32> to vector<8xf32>
    %27 = vector.shape_cast %26 : vector<8xf32> to vector<8x1xf32>
    %28 = math.log %27 : vector<8x1xf32>
    %29 = vector.broadcast %28 : vector<8x1xf32> to vector<8x8xf32>
    %30 = arith.subf %24, %29 : vector<8x8xf32>
    %31 = arith.index_cast %c0_i32_14 : i32 to index
    %c0_20 = arith.constant 0 : index
    %c0_21 = arith.constant 0 : index
    %32 = vector.load %arg7[%31, %c0_20, %c0_21] : memref<8x8x8xf32, #tpu.memory_space<vmem>>, vector<1x8x8xf32>
    %33 = vector.shape_cast %32 : vector<1x8x8xf32> to vector<8x8xf32>
    %34 = vector.shape_cast %30 : vector<8x8xf32> to vector<1x8x8xf32>
    tpu.vector_store %arg7[%31, %c0_20, %c0_21], %34 {strides = array<i32>} : memref<8x8x8xf32, #tpu.memory_space<vmem>>, vector<1x8x8xf32>,
    %c8_i32 = arith.constant 8 : i32
    %35 = arith.muli %arg1, %c8_i32 : i32
    %36 = arith.addi %35, %c0_i32_14 : i32
    %c7_i32 = arith.constant 7 : i32
    %37 = arith.cmpi eq, %36, %c7_i32 : i32
    %38 = arith.extui %37 : i1 to i32
    %c0_i32_22 = arith.constant 0 : i32
    %39 = arith.cmpi ne, %38, %c0_i32_22 : i32
    scf.if %39 {
      %c0_97 = arith.constant 0 : index
      %c0_98 = arith.constant 0 : index
      %223 = vector.load %arg8[%c0_97, %c0_98] : memref<8x32xf32, #tpu.memory_space<vmem>>, vector<8x32xf32>
      tpu.vector_store %arg8[%c0_97, %c0_98], %19 {strides = array<i32>} : memref<8x32xf32, #tpu.memory_space<vmem>>, vector<8x32xf32>,
    } else {
    }
    %c1_i32 = arith.constant 1 : i32
    %cst_23 = arith.constant dense<0.000000e+00> : vector<8x40xf32>
    %40 = tpu.matmul %19, %12, %cst_23 {dimension_numbers = #tpu.dot_dimension_numbers<[1], [0], [0], [1], [0, 0, 1, 1], [], []>} : vector<8x32xf32>, vector<32x40xf32>, vector<8x40xf32> -> vector<8x40xf32>
    %41 = arith.index_cast %c1_i32 : i32 to index
    %c0_24 = arith.constant 0 : index
    %c0_25 = arith.constant 0 : index
    %42 = vector.load %arg10[%41, %c0_24, %c0_25] : memref<8x8x40xf32, #tpu.memory_space<vmem>>, vector<1x8x40xf32>
    %43 = vector.shape_cast %42 : vector<1x8x40xf32> to vector<8x40xf32>
    %44 = arith.addf %40, %43 : vector<8x40xf32>
    %45 = vector.extract_strided_slice %44 {offsets = [0, 0], sizes = [8, 32], strides = [1, 1]} : vector<8x40xf32> to vector<8x32xf32>
    %46 = vector.extract_strided_slice %44 {offsets = [0, 32], sizes = [8, 8], strides = [1, 1]} : vector<8x40xf32> to vector<8x8xf32>
    %cst_26 = arith.constant dense<0xFF800000> : vector<8xf32>
    %47 = vector.multi_reduction <maximumf>, %46, %cst_26 [1] : vector<8x8xf32> to vector<8xf32>
    %48 = vector.shape_cast %47 : vector<8xf32> to vector<8x1xf32>
    %49 = vector.broadcast %48 : vector<8x1xf32> to vector<8x8xf32>
    %50 = arith.subf %46, %49 : vector<8x8xf32>
    %51 = math.exp %50 : vector<8x8xf32>
    %cst_27 = arith.constant dense<0.000000e+00> : vector<8xf32>
    %52 = vector.multi_reduction <add>, %51, %cst_27 [1] : vector<8x8xf32> to vector<8xf32>
    %53 = vector.shape_cast %52 : vector<8xf32> to vector<8x1xf32>
    %54 = math.log %53 : vector<8x1xf32>
    %55 = vector.broadcast %54 : vector<8x1xf32> to vector<8x8xf32>
    %56 = arith.subf %50, %55 : vector<8x8xf32>
    %57 = arith.index_cast %c1_i32 : i32 to index
    %c0_28 = arith.constant 0 : index
    %c0_29 = arith.constant 0 : index
    %58 = vector.load %arg7[%57, %c0_28, %c0_29] : memref<8x8x8xf32, #tpu.memory_space<vmem>>, vector<1x8x8xf32>
    %59 = vector.shape_cast %58 : vector<1x8x8xf32> to vector<8x8xf32>
    %60 = vector.shape_cast %56 : vector<8x8xf32> to vector<1x8x8xf32>
    tpu.vector_store %arg7[%57, %c0_28, %c0_29], %60 {strides = array<i32>} : memref<8x8x8xf32, #tpu.memory_space<vmem>>, vector<1x8x8xf32>,
    %c8_i32_30 = arith.constant 8 : i32
    %61 = arith.muli %arg1, %c8_i32_30 : i32
    %62 = arith.addi %61, %c1_i32 : i32
    %c7_i32_31 = arith.constant 7 : i32
    %63 = arith.cmpi eq, %62, %c7_i32_31 : i32
    %64 = arith.extui %63 : i1 to i32
    %c0_i32_32 = arith.constant 0 : i32
    %65 = arith.cmpi ne, %64, %c0_i32_32 : i32
    scf.if %65 {
      %c0_97 = arith.constant 0 : index
      %c0_98 = arith.constant 0 : index
      %223 = vector.load %arg8[%c0_97, %c0_98] : memref<8x32xf32, #tpu.memory_space<vmem>>, vector<8x32xf32>
      tpu.vector_store %arg8[%c0_97, %c0_98], %45 {strides = array<i32>} : memref<8x32xf32, #tpu.memory_space<vmem>>, vector<8x32xf32>,
    } else {
    }
    %c2_i32 = arith.constant 2 : i32
    %cst_33 = arith.constant dense<0.000000e+00> : vector<8x40xf32>
    %66 = tpu.matmul %45, %12, %cst_33 {dimension_numbers = #tpu.dot_dimension_numbers<[1], [0], [0], [1], [0, 0, 1, 1], [], []>} : vector<8x32xf32>, vector<32x40xf32>, vector<8x40xf32> -> vector<8x40xf32>
    %67 = arith.index_cast %c2_i32 : i32 to index
    %c0_34 = arith.constant 0 : index
    %c0_35 = arith.constant 0 : index
    %68 = vector.load %arg10[%67, %c0_34, %c0_35] : memref<8x8x40xf32, #tpu.memory_space<vmem>>, vector<1x8x40xf32>
    %69 = vector.shape_cast %68 : vector<1x8x40xf32> to vector<8x40xf32>
    %70 = arith.addf %66, %69 : vector<8x40xf32>
    %71 = vector.extract_strided_slice %70 {offsets = [0, 0], sizes = [8, 32], strides = [1, 1]} : vector<8x40xf32> to vector<8x32xf32>
    %72 = vector.extract_strided_slice %70 {offsets = [0, 32], sizes = [8, 8], strides = [1, 1]} : vector<8x40xf32> to vector<8x8xf32>
    %cst_36 = arith.constant dense<0xFF800000> : vector<8xf32>
    %73 = vector.multi_reduction <maximumf>, %72, %cst_36 [1] : vector<8x8xf32> to vector<8xf32>
    %74 = vector.shape_cast %73 : vector<8xf32> to vector<8x1xf32>
    %75 = vector.broadcast %74 : vector<8x1xf32> to vector<8x8xf32>
    %76 = arith.subf %72, %75 : vector<8x8xf32>
    %77 = math.exp %76 : vector<8x8xf32>
    %cst_37 = arith.constant dense<0.000000e+00> : vector<8xf32>
    %78 = vector.multi_reduction <add>, %77, %cst_37 [1] : vector<8x8xf32> to vector<8xf32>
    %79 = vector.shape_cast %78 : vector<8xf32> to vector<8x1xf32>
    %80 = math.log %79 : vector<8x1xf32>
    %81 = vector.broadcast %80 : vector<8x1xf32> to vector<8x8xf32>
    %82 = arith.subf %76, %81 : vector<8x8xf32>
    %83 = arith.index_cast %c2_i32 : i32 to index
    %c0_38 = arith.constant 0 : index
    %c0_39 = arith.constant 0 : index
    %84 = vector.load %arg7[%83, %c0_38, %c0_39] : memref<8x8x8xf32, #tpu.memory_space<vmem>>, vector<1x8x8xf32>
    %85 = vector.shape_cast %84 : vector<1x8x8xf32> to vector<8x8xf32>
    %86 = vector.shape_cast %82 : vector<8x8xf32> to vector<1x8x8xf32>
    tpu.vector_store %arg7[%83, %c0_38, %c0_39], %86 {strides = array<i32>} : memref<8x8x8xf32, #tpu.memory_space<vmem>>, vector<1x8x8xf32>,
    %c8_i32_40 = arith.constant 8 : i32
    %87 = arith.muli %arg1, %c8_i32_40 : i32
    %88 = arith.addi %87, %c2_i32 : i32
    %c7_i32_41 = arith.constant 7 : i32
    %89 = arith.cmpi eq, %88, %c7_i32_41 : i32
    %90 = arith.extui %89 : i1 to i32
    %c0_i32_42 = arith.constant 0 : i32
    %91 = arith.cmpi ne, %90, %c0_i32_42 : i32
    scf.if %91 {
      %c0_97 = arith.constant 0 : index
      %c0_98 = arith.constant 0 : index
      %223 = vector.load %arg8[%c0_97, %c0_98] : memref<8x32xf32, #tpu.memory_space<vmem>>, vector<8x32xf32>
      tpu.vector_store %arg8[%c0_97, %c0_98], %71 {strides = array<i32>} : memref<8x32xf32, #tpu.memory_space<vmem>>, vector<8x32xf32>,
    } else {
    }
    %c3_i32 = arith.constant 3 : i32
    %cst_43 = arith.constant dense<0.000000e+00> : vector<8x40xf32>
    %92 = tpu.matmul %71, %12, %cst_43 {dimension_numbers = #tpu.dot_dimension_numbers<[1], [0], [0], [1], [0, 0, 1, 1], [], []>} : vector<8x32xf32>, vector<32x40xf32>, vector<8x40xf32> -> vector<8x40xf32>
    %93 = arith.index_cast %c3_i32 : i32 to index
    %c0_44 = arith.constant 0 : index
    %c0_45 = arith.constant 0 : index
    %94 = vector.load %arg10[%93, %c0_44, %c0_45] : memref<8x8x40xf32, #tpu.memory_space<vmem>>, vector<1x8x40xf32>
    %95 = vector.shape_cast %94 : vector<1x8x40xf32> to vector<8x40xf32>
    %96 = arith.addf %92, %95 : vector<8x40xf32>
    %97 = vector.extract_strided_slice %96 {offsets = [0, 0], sizes = [8, 32], strides = [1, 1]} : vector<8x40xf32> to vector<8x32xf32>
    %98 = vector.extract_strided_slice %96 {offsets = [0, 32], sizes = [8, 8], strides = [1, 1]} : vector<8x40xf32> to vector<8x8xf32>
    %cst_46 = arith.constant dense<0xFF800000> : vector<8xf32>
    %99 = vector.multi_reduction <maximumf>, %98, %cst_46 [1] : vector<8x8xf32> to vector<8xf32>
    %100 = vector.shape_cast %99 : vector<8xf32> to vector<8x1xf32>
    %101 = vector.broadcast %100 : vector<8x1xf32> to vector<8x8xf32>
    %102 = arith.subf %98, %101 : vector<8x8xf32>
    %103 = math.exp %102 : vector<8x8xf32>
    %cst_47 = arith.constant dense<0.000000e+00> : vector<8xf32>
    %104 = vector.multi_reduction <add>, %103, %cst_47 [1] : vector<8x8xf32> to vector<8xf32>
    %105 = vector.shape_cast %104 : vector<8xf32> to vector<8x1xf32>
    %106 = math.log %105 : vector<8x1xf32>
    %107 = vector.broadcast %106 : vector<8x1xf32> to vector<8x8xf32>
    %108 = arith.subf %102, %107 : vector<8x8xf32>
    %109 = arith.index_cast %c3_i32 : i32 to index
    %c0_48 = arith.constant 0 : index
    %c0_49 = arith.constant 0 : index
    %110 = vector.load %arg7[%109, %c0_48, %c0_49] : memref<8x8x8xf32, #tpu.memory_space<vmem>>, vector<1x8x8xf32>
    %111 = vector.shape_cast %110 : vector<1x8x8xf32> to vector<8x8xf32>
    %112 = vector.shape_cast %108 : vector<8x8xf32> to vector<1x8x8xf32>
    tpu.vector_store %arg7[%109, %c0_48, %c0_49], %112 {strides = array<i32>} : memref<8x8x8xf32, #tpu.memory_space<vmem>>, vector<1x8x8xf32>,
    %c8_i32_50 = arith.constant 8 : i32
    %113 = arith.muli %arg1, %c8_i32_50 : i32
    %114 = arith.addi %113, %c3_i32 : i32
    %c7_i32_51 = arith.constant 7 : i32
    %115 = arith.cmpi eq, %114, %c7_i32_51 : i32
    %116 = arith.extui %115 : i1 to i32
    %c0_i32_52 = arith.constant 0 : i32
    %117 = arith.cmpi ne, %116, %c0_i32_52 : i32
    scf.if %117 {
      %c0_97 = arith.constant 0 : index
      %c0_98 = arith.constant 0 : index
      %223 = vector.load %arg8[%c0_97, %c0_98] : memref<8x32xf32, #tpu.memory_space<vmem>>, vector<8x32xf32>
      tpu.vector_store %arg8[%c0_97, %c0_98], %97 {strides = array<i32>} : memref<8x32xf32, #tpu.memory_space<vmem>>, vector<8x32xf32>,
    } else {
    }
    %c4_i32 = arith.constant 4 : i32
    %cst_53 = arith.constant dense<0.000000e+00> : vector<8x40xf32>
    %118 = tpu.matmul %97, %12, %cst_53 {dimension_numbers = #tpu.dot_dimension_numbers<[1], [0], [0], [1], [0, 0, 1, 1], [], []>} : vector<8x32xf32>, vector<32x40xf32>, vector<8x40xf32> -> vector<8x40xf32>
    %119 = arith.index_cast %c4_i32 : i32 to index
    %c0_54 = arith.constant 0 : index
    %c0_55 = arith.constant 0 : index
    %120 = vector.load %arg10[%119, %c0_54, %c0_55] : memref<8x8x40xf32, #tpu.memory_space<vmem>>, vector<1x8x40xf32>
    %121 = vector.shape_cast %120 : vector<1x8x40xf32> to vector<8x40xf32>
    %122 = arith.addf %118, %121 : vector<8x40xf32>
    %123 = vector.extract_strided_slice %122 {offsets = [0, 0], sizes = [8, 32], strides = [1, 1]} : vector<8x40xf32> to vector<8x32xf32>
    %124 = vector.extract_strided_slice %122 {offsets = [0, 32], sizes = [8, 8], strides = [1, 1]} : vector<8x40xf32> to vector<8x8xf32>
    %cst_56 = arith.constant dense<0xFF800000> : vector<8xf32>
    %125 = vector.multi_reduction <maximumf>, %124, %cst_56 [1] : vector<8x8xf32> to vector<8xf32>
    %126 = vector.shape_cast %125 : vector<8xf32> to vector<8x1xf32>
    %127 = vector.broadcast %126 : vector<8x1xf32> to vector<8x8xf32>
    %128 = arith.subf %124, %127 : vector<8x8xf32>
    %129 = math.exp %128 : vector<8x8xf32>
    %cst_57 = arith.constant dense<0.000000e+00> : vector<8xf32>
    %130 = vector.multi_reduction <add>, %129, %cst_57 [1] : vector<8x8xf32> to vector<8xf32>
    %131 = vector.shape_cast %130 : vector<8xf32> to vector<8x1xf32>
    %132 = math.log %131 : vector<8x1xf32>
    %133 = vector.broadcast %132 : vector<8x1xf32> to vector<8x8xf32>
    %134 = arith.subf %128, %133 : vector<8x8xf32>
    %135 = arith.index_cast %c4_i32 : i32 to index
    %c0_58 = arith.constant 0 : index
    %c0_59 = arith.constant 0 : index
    %136 = vector.load %arg7[%135, %c0_58, %c0_59] : memref<8x8x8xf32, #tpu.memory_space<vmem>>, vector<1x8x8xf32>
    %137 = vector.shape_cast %136 : vector<1x8x8xf32> to vector<8x8xf32>
    %138 = vector.shape_cast %134 : vector<8x8xf32> to vector<1x8x8xf32>
    tpu.vector_store %arg7[%135, %c0_58, %c0_59], %138 {strides = array<i32>} : memref<8x8x8xf32, #tpu.memory_space<vmem>>, vector<1x8x8xf32>,
    %c8_i32_60 = arith.constant 8 : i32
    %139 = arith.muli %arg1, %c8_i32_60 : i32
    %140 = arith.addi %139, %c4_i32 : i32
    %c7_i32_61 = arith.constant 7 : i32
    %141 = arith.cmpi eq, %140, %c7_i32_61 : i32
    %142 = arith.extui %141 : i1 to i32
    %c0_i32_62 = arith.constant 0 : i32
    %143 = arith.cmpi ne, %142, %c0_i32_62 : i32
    scf.if %143 {
      %c0_97 = arith.constant 0 : index
      %c0_98 = arith.constant 0 : index
      %223 = vector.load %arg8[%c0_97, %c0_98] : memref<8x32xf32, #tpu.memory_space<vmem>>, vector<8x32xf32>
      tpu.vector_store %arg8[%c0_97, %c0_98], %123 {strides = array<i32>} : memref<8x32xf32, #tpu.memory_space<vmem>>, vector<8x32xf32>,
    } else {
    }
    %c5_i32 = arith.constant 5 : i32
    %cst_63 = arith.constant dense<0.000000e+00> : vector<8x40xf32>
    %144 = tpu.matmul %123, %12, %cst_63 {dimension_numbers = #tpu.dot_dimension_numbers<[1], [0], [0], [1], [0, 0, 1, 1], [], []>} : vector<8x32xf32>, vector<32x40xf32>, vector<8x40xf32> -> vector<8x40xf32>
    %145 = arith.index_cast %c5_i32 : i32 to index
    %c0_64 = arith.constant 0 : index
    %c0_65 = arith.constant 0 : index
    %146 = vector.load %arg10[%145, %c0_64, %c0_65] : memref<8x8x40xf32, #tpu.memory_space<vmem>>, vector<1x8x40xf32>
    %147 = vector.shape_cast %146 : vector<1x8x40xf32> to vector<8x40xf32>
    %148 = arith.addf %144, %147 : vector<8x40xf32>
    %149 = vector.extract_strided_slice %148 {offsets = [0, 0], sizes = [8, 32], strides = [1, 1]} : vector<8x40xf32> to vector<8x32xf32>
    %150 = vector.extract_strided_slice %148 {offsets = [0, 32], sizes = [8, 8], strides = [1, 1]} : vector<8x40xf32> to vector<8x8xf32>
    %cst_66 = arith.constant dense<0xFF800000> : vector<8xf32>
    %151 = vector.multi_reduction <maximumf>, %150, %cst_66 [1] : vector<8x8xf32> to vector<8xf32>
    %152 = vector.shape_cast %151 : vector<8xf32> to vector<8x1xf32>
    %153 = vector.broadcast %152 : vector<8x1xf32> to vector<8x8xf32>
    %154 = arith.subf %150, %153 : vector<8x8xf32>
    %155 = math.exp %154 : vector<8x8xf32>
    %cst_67 = arith.constant dense<0.000000e+00> : vector<8xf32>
    %156 = vector.multi_reduction <add>, %155, %cst_67 [1] : vector<8x8xf32> to vector<8xf32>
    %157 = vector.shape_cast %156 : vector<8xf32> to vector<8x1xf32>
    %158 = math.log %157 : vector<8x1xf32>
    %159 = vector.broadcast %158 : vector<8x1xf32> to vector<8x8xf32>
    %160 = arith.subf %154, %159 : vector<8x8xf32>
    %161 = arith.index_cast %c5_i32 : i32 to index
    %c0_68 = arith.constant 0 : index
    %c0_69 = arith.constant 0 : index
    %162 = vector.load %arg7[%161, %c0_68, %c0_69] : memref<8x8x8xf32, #tpu.memory_space<vmem>>, vector<1x8x8xf32>
    %163 = vector.shape_cast %162 : vector<1x8x8xf32> to vector<8x8xf32>
    %164 = vector.shape_cast %160 : vector<8x8xf32> to vector<1x8x8xf32>
    tpu.vector_store %arg7[%161, %c0_68, %c0_69], %164 {strides = array<i32>} : memref<8x8x8xf32, #tpu.memory_space<vmem>>, vector<1x8x8xf32>,
    %c8_i32_70 = arith.constant 8 : i32
    %165 = arith.muli %arg1, %c8_i32_70 : i32
    %166 = arith.addi %165, %c5_i32 : i32
    %c7_i32_71 = arith.constant 7 : i32
    %167 = arith.cmpi eq, %166, %c7_i32_71 : i32
    %168 = arith.extui %167 : i1 to i32
    %c0_i32_72 = arith.constant 0 : i32
    %169 = arith.cmpi ne, %168, %c0_i32_72 : i32
    scf.if %169 {
      %c0_97 = arith.constant 0 : index
      %c0_98 = arith.constant 0 : index
      %223 = vector.load %arg8[%c0_97, %c0_98] : memref<8x32xf32, #tpu.memory_space<vmem>>, vector<8x32xf32>
      tpu.vector_store %arg8[%c0_97, %c0_98], %149 {strides = array<i32>} : memref<8x32xf32, #tpu.memory_space<vmem>>, vector<8x32xf32>,
    } else {
    }
    %c6_i32 = arith.constant 6 : i32
    %cst_73 = arith.constant dense<0.000000e+00> : vector<8x40xf32>
    %170 = tpu.matmul %149, %12, %cst_73 {dimension_numbers = #tpu.dot_dimension_numbers<[1], [0], [0], [1], [0, 0, 1, 1], [], []>} : vector<8x32xf32>, vector<32x40xf32>, vector<8x40xf32> -> vector<8x40xf32>
    %171 = arith.index_cast %c6_i32 : i32 to index
    %c0_74 = arith.constant 0 : index
    %c0_75 = arith.constant 0 : index
    %172 = vector.load %arg10[%171, %c0_74, %c0_75] : memref<8x8x40xf32, #tpu.memory_space<vmem>>, vector<1x8x40xf32>
    %173 = vector.shape_cast %172 : vector<1x8x40xf32> to vector<8x40xf32>
    %174 = arith.addf %170, %173 : vector<8x40xf32>
    %175 = vector.extract_strided_slice %174 {offsets = [0, 0], sizes = [8, 32], strides = [1, 1]} : vector<8x40xf32> to vector<8x32xf32>
    %176 = vector.extract_strided_slice %174 {offsets = [0, 32], sizes = [8, 8], strides = [1, 1]} : vector<8x40xf32> to vector<8x8xf32>
    %cst_76 = arith.constant dense<0xFF800000> : vector<8xf32>
    %177 = vector.multi_reduction <maximumf>, %176, %cst_76 [1] : vector<8x8xf32> to vector<8xf32>
    %178 = vector.shape_cast %177 : vector<8xf32> to vector<8x1xf32>
    %179 = vector.broadcast %178 : vector<8x1xf32> to vector<8x8xf32>
    %180 = arith.subf %176, %179 : vector<8x8xf32>
    %181 = math.exp %180 : vector<8x8xf32>
    %cst_77 = arith.constant dense<0.000000e+00> : vector<8xf32>
    %182 = vector.multi_reduction <add>, %181, %cst_77 [1] : vector<8x8xf32> to vector<8xf32>
    %183 = vector.shape_cast %182 : vector<8xf32> to vector<8x1xf32>
    %184 = math.log %183 : vector<8x1xf32>
    %185 = vector.broadcast %184 : vector<8x1xf32> to vector<8x8xf32>
    %186 = arith.subf %180, %185 : vector<8x8xf32>
    %187 = arith.index_cast %c6_i32 : i32 to index
    %c0_78 = arith.constant 0 : index
    %c0_79 = arith.constant 0 : index
    %188 = vector.load %arg7[%187, %c0_78, %c0_79] : memref<8x8x8xf32, #tpu.memory_space<vmem>>, vector<1x8x8xf32>
    %189 = vector.shape_cast %188 : vector<1x8x8xf32> to vector<8x8xf32>
    %190 = vector.shape_cast %186 : vector<8x8xf32> to vector<1x8x8xf32>
    tpu.vector_store %arg7[%187, %c0_78, %c0_79], %190 {strides = array<i32>} : memref<8x8x8xf32, #tpu.memory_space<vmem>>, vector<1x8x8xf32>,
    %c8_i32_80 = arith.constant 8 : i32
    %191 = arith.muli %arg1, %c8_i32_80 : i32
    %192 = arith.addi %191, %c6_i32 : i32
    %c7_i32_81 = arith.constant 7 : i32
    %193 = arith.cmpi eq, %192, %c7_i32_81 : i32
    %194 = arith.extui %193 : i1 to i32
    %c0_i32_82 = arith.constant 0 : i32
    %195 = arith.cmpi ne, %194, %c0_i32_82 : i32
    scf.if %195 {
      %c0_97 = arith.constant 0 : index
      %c0_98 = arith.constant 0 : index
      %223 = vector.load %arg8[%c0_97, %c0_98] : memref<8x32xf32, #tpu.memory_space<vmem>>, vector<8x32xf32>
      tpu.vector_store %arg8[%c0_97, %c0_98], %175 {strides = array<i32>} : memref<8x32xf32, #tpu.memory_space<vmem>>, vector<8x32xf32>,
    } else {
    }
    %c7_i32_83 = arith.constant 7 : i32
    %cst_84 = arith.constant dense<0.000000e+00> : vector<8x40xf32>
    %196 = tpu.matmul %175, %12, %cst_84 {dimension_numbers = #tpu.dot_dimension_numbers<[1], [0], [0], [1], [0, 0, 1, 1], [], []>} : vector<8x32xf32>, vector<32x40xf32>, vector<8x40xf32> -> vector<8x40xf32>
    %197 = arith.index_cast %c7_i32_83 : i32 to index
    %c0_85 = arith.constant 0 : index
    %c0_86 = arith.constant 0 : index
    %198 = vector.load %arg10[%197, %c0_85, %c0_86] : memref<8x8x40xf32, #tpu.memory_space<vmem>>, vector<1x8x40xf32>
    %199 = vector.shape_cast %198 : vector<1x8x40xf32> to vector<8x40xf32>
    %200 = arith.addf %196, %199 : vector<8x40xf32>
    %201 = vector.extract_strided_slice %200 {offsets = [0, 0], sizes = [8, 32], strides = [1, 1]} : vector<8x40xf32> to vector<8x32xf32>
    %202 = vector.extract_strided_slice %200 {offsets = [0, 32], sizes = [8, 8], strides = [1, 1]} : vector<8x40xf32> to vector<8x8xf32>
    %cst_87 = arith.constant dense<0xFF800000> : vector<8xf32>
    %203 = vector.multi_reduction <maximumf>, %202, %cst_87 [1] : vector<8x8xf32> to vector<8xf32>
    %204 = vector.shape_cast %203 : vector<8xf32> to vector<8x1xf32>
    %205 = vector.broadcast %204 : vector<8x1xf32> to vector<8x8xf32>
    %206 = arith.subf %202, %205 : vector<8x8xf32>
    %207 = math.exp %206 : vector<8x8xf32>
    %cst_88 = arith.constant dense<0.000000e+00> : vector<8xf32>
    %208 = vector.multi_reduction <add>, %207, %cst_88 [1] : vector<8x8xf32> to vector<8xf32>
    %209 = vector.shape_cast %208 : vector<8xf32> to vector<8x1xf32>
    %210 = math.log %209 : vector<8x1xf32>
    %211 = vector.broadcast %210 : vector<8x1xf32> to vector<8x8xf32>
    %212 = arith.subf %206, %211 : vector<8x8xf32>
    %213 = arith.index_cast %c7_i32_83 : i32 to index
    %c0_89 = arith.constant 0 : index
    %c0_90 = arith.constant 0 : index
    %214 = vector.load %arg7[%213, %c0_89, %c0_90] : memref<8x8x8xf32, #tpu.memory_space<vmem>>, vector<1x8x8xf32>
    %215 = vector.shape_cast %214 : vector<1x8x8xf32> to vector<8x8xf32>
    %216 = vector.shape_cast %212 : vector<8x8xf32> to vector<1x8x8xf32>
    tpu.vector_store %arg7[%213, %c0_89, %c0_90], %216 {strides = array<i32>} : memref<8x8x8xf32, #tpu.memory_space<vmem>>, vector<1x8x8xf32>,
    %c8_i32_91 = arith.constant 8 : i32
    %217 = arith.muli %arg1, %c8_i32_91 : i32
    %218 = arith.addi %217, %c7_i32_83 : i32
    %c7_i32_92 = arith.constant 7 : i32
    %219 = arith.cmpi eq, %218, %c7_i32_92 : i32
    %220 = arith.extui %219 : i1 to i32
    %c0_i32_93 = arith.constant 0 : i32
    %221 = arith.cmpi ne, %220, %c0_i32_93 : i32
    scf.if %221 {
      %c0_97 = arith.constant 0 : index
      %c0_98 = arith.constant 0 : index
      %223 = vector.load %arg8[%c0_97, %c0_98] : memref<8x32xf32, #tpu.memory_space<vmem>>, vector<8x32xf32>
      tpu.vector_store %arg8[%c0_97, %c0_98], %201 {strides = array<i32>} : memref<8x32xf32, #tpu.memory_space<vmem>>, vector<8x32xf32>,
    } else {
    }
    %c8_i32_94 = arith.constant 8 : i32
    %c0_95 = arith.constant 0 : index
    %c0_96 = arith.constant 0 : index
    %222 = vector.load %arg9[%c0_95, %c0_96] : memref<8x32xf32, #tpu.memory_space<vmem>>, vector<8x32xf32>
    tpu.vector_store %arg9[%c0_95, %c0_96], %201 {strides = array<i32>} : memref<8x32xf32, #tpu.memory_space<vmem>>, vector<8x32xf32>,
    return
  }
  func.func @transform_0(%arg0: i32, %arg1: i32) -> (i32, i32, i32) {
    %c0_i32 = arith.constant 0 : i32
    %c0_i32_0 = arith.constant 0 : i32
    return %arg1, %arg0, %c0_i32 : i32, i32, i32
  }
  func.func @transform_1(%arg0: i32, %arg1: i32) -> (i32, i32) {
    %c0_i32 = arith.constant 0 : i32
    %c0_i32_0 = arith.constant 0 : i32
    return %arg0, %c0_i32 : i32, i32
  }
  func.func @transform_2(%arg0: i32, %arg1: i32) -> (i32, i32) {
    %c0_i32 = arith.constant 0 : i32
    %c0_i32_0 = arith.constant 0 : i32
    %c0_i32_1 = arith.constant 0 : i32
    return %c0_i32, %c0_i32_0 : i32, i32
  }
  func.func @transform_3(%arg0: i32, %arg1: i32) -> (i32, i32) {
    %c0_i32 = arith.constant 0 : i32
    %c0_i32_0 = arith.constant 0 : i32
    %c0_i32_1 = arith.constant 0 : i32
    return %c0_i32, %c0_i32_0 : i32, i32
  }
  func.func @transform_4(%arg0: i32, %arg1: i32) -> (i32, i32) {
    %c0_i32 = arith.constant 0 : i32
    %c0_i32_0 = arith.constant 0 : i32
    %c0_i32_1 = arith.constant 0 : i32
    return %c0_i32, %c0_i32_0 : i32, i32
  }
  func.func @transform_5(%arg0: i32, %arg1: i32) -> (i32, i32, i32) {
    %c0_i32 = arith.constant 0 : i32
    %c0_i32_0 = arith.constant 0 : i32
    return %arg1, %arg0, %c0_i32 : i32, i32, i32
  }
  func.func @transform_6(%arg0: i32, %arg1: i32) -> (i32, i32) {
    %c0_i32 = arith.constant 0 : i32
    %c0_i32_0 = arith.constant 0 : i32
    return %arg0, %c0_i32 : i32, i32
  }
}

</mosaic_0001>

<bundles_post_ra>
// kernel: tpu_custom_call.1
= control target key start
LH: loop header
LB: loop body
LE: loop exit
PB: predicated region body
PF: predicated region fallthrough
CT: control target
= control target key end

     0   :  { %12 = vsyncpa [#allocation5], 0  ;;  %s972_s0 = inlined_call_operand.hbm [shape: f32[8,8,16], index: 0, kind: input, shape index: {}]   ;;  %s973_s1 = inlined_call_operand.hbm [shape: f32[8,32], index: 1, kind: input, shape index: {}, may-alias: {1,6}]   ;;  %s974_s2 = inlined_call_operand.vmem [shape: f32[16,40], index: 2, kind: input, shape index: {}]   ;;  %s975_s3 = inlined_call_operand.hbm [shape: f32[32,40], index: 3, kind: input, shape index: {}]   ;;  %s976_s4 = inlined_call_operand.vmem [shape: f32[1,40], index: 4, kind: input, shape index: {}]   ;;  %s977_s5 = inlined_call_operand.hbm [shape: f32[8,8,8], index: 5, kind: output, shape index: {0}]   ;;  %s978_s6 = inlined_call_operand.hbm [shape: f32[8,32], index: 6, kind: output, shape index: {1}, may-alias: {1,6}]  }
   0x1   :  { %13 = vsyncpa [#allocation8], 0 }
   0x2   :  { %14 = vsyncpa [#allocation6], 0  ;;  %s34_s23 = sshll.u32 %s973_s1, 4  ;;  %s35_s23 = int_to_ptr.hbm [resolvable:$true] %s34_s23 }
   0x3   :  { %15 = vsyncpa [#allocation12], 0  ;;  %s819_s24 = smov [#allocation7]   ;;  %s20_s28 = sshll.u32 %s972_s0, 4  ;;  %s21_s28 = int_to_ptr.hbm [resolvable:$true] %s20_s28 }
   0x4   :  { %s36_s25 = sshll.u32 %s819_s24, 4  ;;  %s820_s29 = smov [#allocation4]   ;;  %s37_s25 = int_to_ptr.vmem [resolvable:$true] %s36_s25 }
   0x5   :  { %39 = dma.hbm_to_vmem [thread:$0]  %s35_s23, 128, %s37_s25, [#allocation8]  }
   0x6   :  { %s22_s30 = sshll.u32 %s820_s29, 4  ;;  %s821_s7 = smov 128   ;;  %s23_s30 = int_to_ptr.vmem [resolvable:$true] %s22_s30 }
   0x7   :  { %s822_s8 = smov 8   ;;  %s46_s10 = sshll.u32 %s975_s3, 4  ;;  %s47_s10 = int_to_ptr.hbm [resolvable:$true] %s46_s10 }
   0x8   :  { %28 = dma.hbm_to_vmem [thread:$0]  %s21_s28, 1024, %s23_s30, [#allocation5], %s821_s7, %s821_s7, %s822_s8  }
   0x9   :  { %s823_s11 = smov [#allocation9]  }
   0xa   :  { %s48_s12 = sshll.u32 %s823_s11, 4  ;;  %s49_s12 = int_to_ptr.vmem [resolvable:$true] %s48_s12 }
   0xb   :  { %54 = dma.hbm_to_vmem [thread:$0]  %s47_s10, 512, %s49_s12, [#allocation8], %s821_s7, %s821_s7, %s822_s8  }
   0xc   :  { %811 = dma.done.wait [#allocation5], 1024  }
   0xd   :  { %812 = vsyncadd [#allocation5], 4294966272 }
   0xe   :  { %813 = dma.done.wait [#allocation8], 640  }
   0xf   :  { %814 = vsyncadd [#allocation8], 4294966656  ;;  %v85_v0 = vld [vmem:[%s974_s2 + $0x8] sm:$0xff]  ;;  %v84_v1 = vld [vmem:[%s974_s2] sm:$0xff]  ;;  %vm74_vm0 = vcmask 261120   ;;  %vm90_vm1 = vcmask 130048  }
  0x10   :  { %129 = vmatpush.msra.mxu0 %v85_v0  ;;  %v76_v2 = vld [vmem:[#allocation4] sm:$0xff]  ;;  %v167_v4 = vld [vmem:[#allocation9 + $0x10] sm:$0xff]  ;;  %648 = vmatpush.msra.mxu3 %v85_v0  ;;  %v166_v6 = vld [vmem:[#allocation9 + $0x8] sm:$0xff]  ;;  %vm156_vm2 = vcmask 326656   ;;  %vm195_vm3 = vcmask 326912   ;;  %vm206_vm4 = vcmask 64512  }
  0x11   :  { %v168_v3 = vld [vmem:[#allocation9 + $0x18] sm:$0xff]  ;;  %v165_v7 = vld [vmem:[#allocation9] sm:$0xff]  ;;  %v891_v11 = vld [vmem:[%s976_s4] ss:$0 sm:$0xff]  ;;  %s824_s4 = smov 96   ;;  %s825_s16 = smov [#allocation11]  }
  0x12   :  { %187 = vmatpush.msra.mxu1 %v168_v3  ;;  %v73_v5 = vld [vmem:[#allocation7] sm:$0xff]  ;;  %241 = vmatpush.msra.mxu2 %v168_v3  ;;  %v77_v9 = vld [vmem:[#allocation4 + $0x8] sm:$0xff]  ;;  %v82_v18 = vld [vmem:[#allocation4 + $0x30] sm:$0xff]  ;;  %s614_s17 = sshll.u32 %s825_s16, 4  ;;  %s616_s20 = sshll.u32 %s978_s6, 4  ;;  %s615_s17 = int_to_ptr.vmem [resolvable:$true] %s614_s17  ;;  %s617_s20 = int_to_ptr.hbm [resolvable:$true] %s616_s20 }
  0x13   :  { %130 = vmatpush.msra.mxu0 %v84_v1  ;;  %75 = vst.msk [vmem:[#allocation2] sm:$0xff] %vm74_vm0, %v73_v5  ;;  %649 = vmatpush.msra.mxu3 %v84_v1  ;;  %v81_v10 = vld [vmem:[#allocation4 + $0x28] sm:$0xff]  ;;  %v83_v21 = vld [vmem:[#allocation4 + $0x38] sm:$0xff]  ;;  %v78_v22 = vld [vmem:[#allocation4 + $0x10] sm:$0xff]  ;;  %s826_s21 = smov [#allocation10]   ;;  %s602_s25 = sshll.u32 %s977_s5, 4  ;;  %s603_s25 = int_to_ptr.hbm [resolvable:$true] %s602_s25 }
  0x14   :  { %632 = vmatmul.msk.f32.vlgmr.msra.gmra.mxu0 %vm90_vm1, %v76_v2  ;;  %188 = vmatpush.msra.mxu1 %v167_v4  ;;  %v79_v36 = vld [vmem:[#allocation4 + $0x18] sm:$0xff]  ;;  %v80_v54 = vld [vmem:[#allocation4 + $0x20] sm:$0xff]  ;;  %s600_s22 = sshll.u32 %s826_s21, 4  ;;  %s601_s22 = int_to_ptr.vmem [resolvable:$true] %s600_s22 }
  0x15   :  { %242 = vmatpush.msra.mxu2 %v167_v4  ;;  %294 = vmatpush.msrb.mxu3 %v168_v3 }
  0x16   :  { %189 = vmatpush.msra.mxu1 %v166_v6  ;;  %637 = vmatmul.msk.f32.vlgmr.msra.gmra.mxu3 %vm90_vm1, %v81_v10 }
  0x17   :  { %243 = vmatpush.msra.mxu2 %v166_v6  ;;  %295 = vmatpush.msrb.mxu3 %v167_v4 }
  0x18   :  { %190 = vmatpush.msra.mxu1 %v165_v7 }
  0x19   :  { %244 = vmatpush.msra.mxu2 %v165_v7  ;;  %296 = vmatpush.msrb.mxu3 %v166_v6 }
  0x1a   :  { %v169_v8 = vld [vmem:[#allocation2] sm:$0xff]  ;;  %347 = vmatpush.msrb.mxu1 %v168_v3 }
  0x1b   :  { %400 = vmatpush.msrb.mxu2 %v168_v3  ;;  %640 = vmatmul.msk.f32.vlgmr.msra.gmra.mxu1 %vm74_vm0, %v169_v8 }
  0x1c   :  { %297 = vmatpush.msrb.mxu3 %v165_v7  ;;  %348 = vmatpush.msrb.mxu1 %v167_v4 }
  0x1d   :  { %401 = vmatpush.msrb.mxu2 %v167_v4  ;;  %633 = vmatmul.msk.f32.gmra.mxu0 %vm90_vm1, %v77_v9 }
  0x1e   :  { %349 = vmatpush.msrb.mxu1 %v166_v6  ;;  %453 = vmatpush.msra.mxu3 %v168_v3 }
  0x1f   :  { %402 = vmatpush.msrb.mxu2 %v166_v6  ;;  %638 = vmatmul.msk.f32.gmra.mxu3 %vm90_vm1, %v82_v18 }
  0x20   :  { %350 = vmatpush.msrb.mxu1 %v165_v7  ;;  %454 = vmatpush.msra.mxu3 %v167_v4 }
  0x21   :  { %403 = vmatpush.msrb.mxu2 %v165_v7 }
  0x22   :  { %506 = vmatpush.msra.mxu1 %v168_v3  ;;  %455 = vmatpush.msra.mxu3 %v166_v6 }
  0x24   :  { %507 = vmatpush.msra.mxu1 %v167_v4  ;;  %456 = vmatpush.msra.mxu3 %v165_v7 }
  0x25   :  { %634 = vmatmul.msk.f32.gmra.mxu0 %vm90_vm1, %v78_v22 }
  0x26   :  { %508 = vmatpush.msra.mxu1 %v166_v6 }
  0x27   :  { %639 = vmatmul.msk.f32.gmra.mxu3 %vm90_vm1, %v83_v21 }
  0x28   :  { %509 = vmatpush.msra.mxu1 %v165_v7 }
  0x2d   :  { %635 = vmatmul.msk.f32.gmra.mxu0 %vm90_vm1, %v79_v36 }
  0x35   :  { %636 = vmatmul.msk.f32.gmra.mxu0 %vm90_vm1, %v80_v54 }
  0x91   :  { %v132_v12 = vpop.f32.mrf.mxu0 }
  0x92   :  { %v133_v13 = vadd.f32 %v891_v11, %v132_v12 }
  0x94   :  { %157 = vst.msk [vmem:[#allocation3] sm:$0xff] %vm156_vm2, %v133_v13 }
  0x98   :  { %v192_v14 = vpop.f32.mrf.mxu1 }
  0x99   :  { %v147_v23 = vpop.f32.mrf.mxu3 }
  0x9a   :  { %v135_v19 = vpop.f32.mrf.mxu0  ;;  %v148_v24 = vadd.f32 %v891_v11, %v147_v23 }
  0x9b   :  { %v170_v15 = vld [vmem:[#allocation3] sm:$0xff]  ;;  %v136_v20 = vadd.f32 %v891_v11, %v135_v19 }
  0x9c   :  { %v193_v16 = vadd.f32 %v192_v14, %v170_v15  ;;  %162 = vst.msk [vmem:[#allocation3 + $0x28] sm:$0xff] %vm156_vm2, %v148_v24 }
  0x9d   :  { %158 = vst.msk [vmem:[#allocation3 + $0x8] sm:$0xff] %vm156_vm2, %v136_v20 }
  0x9e   :  { %641 = vmatmul.msk.f32.vlgmr.msra.gmra.mxu2 %vm74_vm0, %v193_v16  ;;  %v196_v17 = vsel %vm195_vm3, %v193_v16, -inf }
  0x9f   :  { %197 = vmax.xlane.f32.xlu0 %v196_v17  ;;  %559 = vmatpush.msra.mxu2 %v168_v3 }
  0xa1   :  { %560 = vmatpush.msra.mxu2 %v167_v4 }
  0xa2   :  { %v150_v33 = vpop.f32.mrf.mxu3  ;;  %v138_v35 = vpop.f32.mrf.mxu0 }
  0xa3   :  { %561 = vmatpush.msra.mxu2 %v166_v6  ;;  %v151_v34 = vadd.f32 %v891_v11, %v150_v33  ;;  %v139_v37 = vadd.f32 %v891_v11, %v138_v35 }
  0xa4   :  { %v225_v29 = vld [vmem:[#allocation3 + $0x8] sm:$0xff] }
  0xa5   :  { %562 = vmatpush.msra.mxu2 %v165_v7  ;;  %163 = vst.msk [vmem:[#allocation3 + $0x30] sm:$0xff] %vm156_vm2, %v151_v34 }
  0xa6   :  { %159 = vst.msk [vmem:[#allocation3 + $0x10] sm:$0xff] %vm156_vm2, %v139_v37 }
  0xaa   :  { %v153_v38 = vpop.f32.mrf.mxu3  ;;  %v141_v50 = vpop.f32.mrf.mxu0 }
  0xab   :  { %v154_v39 = vadd.f32 %v891_v11, %v153_v38  ;;  %v142_v51 = vadd.f32 %v891_v11, %v141_v50 }
  0xad   :  { %164 = vst.msk [vmem:[#allocation3 + $0x38] sm:$0xff] %vm156_vm2, %v154_v39  ;;  %v278_v46 = vld [vmem:[#allocation3 + $0x10] sm:$0xff] }
  0xae   :  { %160 = vst.msk [vmem:[#allocation3 + $0x18] sm:$0xff] %vm156_vm2, %v142_v51 }
  0xb2   :  { %v144_v7 = vpop.f32.mrf.mxu0 }
  0xb3   :  { %v145_v8 = vadd.f32 %v891_v11, %v144_v7 }
  0xb5   :  { %v331_v62 = vld [vmem:[#allocation3 + $0x18] sm:$0xff]  ;;  %161 = vst.msk [vmem:[#allocation3 + $0x20] sm:$0xff] %vm156_vm2, %v145_v8 }
  0xbc   :  { %v384_v13 = vld [vmem:[#allocation3 + $0x20] sm:$0xff] }
 0x112   :  { %v198_v25 = vpop.xlane.xlu0 %197 }
 0x113   :  { %v199_v26 = vsub.f32 %v193_v16, %v198_v25 }
 0x115   :  { %v200_v27 = vmul.f32 1.442695, %v199_v26 }
 0x117   :  { %659 = vpow2.f32 %v200_v27 }
 0x11d   :  { %v660_v28 = vpop.eup %659 }
 0x11e   :  { %203 = vrot.lane.b32.xlu0 %v660_v28, %s824_s4 }
 0x121   :  { %v246_v30 = vpop.f32.mrf.mxu2 }
 0x122   :  { %v247_v31 = vadd.f32 %v246_v30, %v225_v29 }
 0x124   :  { %642 = vmatmul.msk.f32.vlgmr.msrb.gmra.mxu3 %vm74_vm0, %v247_v31  ;;  %v249_v32 = vsel %vm195_vm3, %v247_v31, -inf }
 0x125   :  { %250 = vmax.xlane.f32.xlu2 %v249_v32 }
 0x190   :  { %v204_v40 = vpop.permute.xlu0 %203 }
 0x191   :  { %v207_v41 = vsel %vm206_vm4, %v204_v40, 0.0  ;;  %v490_v40 = vld [vmem:[#allocation3 + $0x30] sm:$0xff] }
 0x192   :  { %208 = vadd.xlane.f32.xlu1 %v207_v41 }
 0x198   :  { %v251_v42 = vpop.xlane.xlu2 %250 }
 0x199   :  { %v252_v43 = vsub.f32 %v247_v31, %v251_v42  ;;  %v437_v31 = vld [vmem:[#allocation3 + $0x28] sm:$0xff] }
 0x19b   :  { %v253_v44 = vmul.f32 1.442695, %v252_v43 }
 0x19d   :  { %661 = vpow2.f32 %v253_v44 }
 0x1a3   :  { %v662_v45 = vpop.eup %661 }
 0x1a4   :  { %256 = vrot.lane.b32.xlu2 %v662_v45, %s824_s4 }
 0x1a7   :  { %v299_v47 = vpop.f32.mrf.mxu3 }
 0x1a8   :  { %v300_v48 = vadd.f32 %v299_v47, %v278_v46 }
 0x1aa   :  { %643 = vmatmul.msk.f32.vlgmr.msrb.gmra.mxu1 %vm74_vm0, %v300_v48  ;;  %v302_v49 = vsel %vm195_vm3, %v300_v48, -inf }
 0x1ab   :  { %303 = vmax.xlane.f32.xlu1 %v302_v49 }
 0x1fe   :  { %v257_v52 = vpop.permute.xlu2 %256 }
 0x1ff   :  { %v259_v53 = vsel %vm206_vm4, %v257_v52, 0.0 }
 0x200   :  { %260 = vadd.xlane.f32.xlu0 %v259_v53 }
 0x205   :  { %v209_v55 = vpop.xlane.xlu1 %208 }
 0x206   :  { %663 = vlog2.f32 %v209_v55  ;;  %v543_v55 = vld [vmem:[#allocation3 + $0x38] sm:$0xff] }
 0x20c   :  { %v664_v56 = vpop.eup %663 }
 0x20d   :  { %v211_v57 = vmul.f32 0.6931472, %v664_v56 }
 0x20f   :  { %v212_v58 = vsub.f32 %v199_v26, %v211_v57 }
 0x211   :  { %214 = vrot.lane.b32.xlu1 %v212_v58, %s824_s4 }
 0x21e   :  { %v304_v59 = vpop.xlane.xlu1 %303 }
 0x21f   :  { %v305_v60 = vsub.f32 %v300_v48, %v304_v59 }
 0x221   :  { %v306_v61 = vmul.f32 1.442695, %v305_v60 }
 0x223   :  { %665 = vpow2.f32 %v306_v61 }
 0x227   :  { %v352_v63 = vpop.f32.mrf.mxu1 }
 0x228   :  { %v353_v0 = vadd.f32 %v352_v63, %v331_v62 }
 0x229   :  { %v666_v1 = vpop.eup %665 }
 0x22a   :  { %644 = vmatmul.msk.f32.vlgmr.msrb.gmra.mxu2 %vm74_vm0, %v353_v0  ;;  %309 = vrot.lane.b32.xlu2 %v666_v1, %s824_s4  ;;  %v355_v2 = vsel %vm195_vm3, %v353_v0, -inf }
 0x23b   :  { %356 = vmax.xlane.f32.xlu1 %v355_v2 }
 0x273   :  { %v261_v3 = vpop.xlane.xlu0 %260 }
 0x274   :  { %667 = vlog2.f32 %v261_v3 }
 0x27a   :  { %v668_v4 = vpop.eup %667 }
 0x27b   :  { %v263_v5 = vmul.f32 0.6931472, %v668_v4 }
 0x27d   :  { %v264_v6 = vsub.f32 %v252_v43, %v263_v5 }
 0x27f   :  { %266 = vrot.lane.b32.xlu2 %v264_v6, %s824_s4 }
 0x283   :  { %v215_v9 = vpop.permute.xlu1 %214 }
 0x284   :  { %217 = vst.msk [vmem:[#allocation10] sm:$0xff] %vm206_vm4, %v215_v9  ;;  %v310_v10 = vpop.permute.xlu2 %309 }
 0x285   :  { %v312_v12 = vsel %vm206_vm4, %v310_v10, 0.0 }
 0x2a8   :  { %313 = vadd.xlane.f32.xlu2 %v312_v12 }
 0x2ad   :  { %v405_v14 = vpop.f32.mrf.mxu2 }
 0x2ae   :  { %v406_v15 = vadd.f32 %v405_v14, %v384_v13  ;;  %v357_v16 = vpop.xlane.xlu1 %356 }
 0x2af   :  { %v358_v17 = vsub.f32 %v353_v0, %v357_v16 }
 0x2b0   :  { %645 = vmatmul.msk.f32.vlgmr.msra.gmra.mxu3 %vm74_vm0, %v406_v15  ;;  %v408_v18 = vsel %vm195_vm3, %v406_v15, -inf }
 0x2b1   :  { %v359_v19 = vmul.f32 1.442695, %v358_v17  ;;  %409 = vmax.xlane.f32.xlu0 %v408_v18 }
 0x2b3   :  { %669 = vpow2.f32 %v359_v19 }
 0x2b9   :  { %v670_v11 = vpop.eup %669 }
 0x2ba   :  { %362 = vrot.lane.b32.xlu1 %v670_v11, %s824_s4 }
 0x2d9   :  { %v267_v20 = vpop.permute.xlu2 %266 }
 0x2da   :  { %270 = vst.msk [vmem:[#allocation10 + $0x8] sm:$0xff] %vm206_vm4, %v267_v20 }
 0x31b   :  { %v314_v21 = vpop.xlane.xlu2 %313 }
 0x31c   :  { %671 = vlog2.f32 %v314_v21 }
 0x322   :  { %v672_v22 = vpop.eup %671 }
 0x323   :  { %v316_v23 = vmul.f32 0.6931472, %v672_v22 }
 0x324   :  { %v410_v24 = vpop.xlane.xlu0 %409 }
 0x325   :  { %v411_v25 = vsub.f32 %v406_v15, %v410_v24  ;;  %v317_v26 = vsub.f32 %v305_v60, %v316_v23 }
 0x327   :  { %v412_v27 = vmul.f32 1.442695, %v411_v25  ;;  %319 = vrot.lane.b32.xlu0 %v317_v26, %s824_s4 }
 0x329   :  { %673 = vpow2.f32 %v412_v27 }
 0x32c   :  { %v363_v28 = vpop.permute.xlu1 %362 }
 0x32d   :  { %v365_v29 = vsel %vm206_vm4, %v363_v28, 0.0 }
 0x32e   :  { %366 = vadd.xlane.f32.xlu2 %v365_v29 }
 0x32f   :  { %v674_v30 = vpop.eup %673 }
 0x330   :  { %415 = vrot.lane.b32.xlu0 %v674_v30, %s824_s4 }
 0x333   :  { %v458_v32 = vpop.f32.mrf.mxu3 }
 0x334   :  { %v459_v33 = vadd.f32 %v458_v32, %v437_v31 }
 0x336   :  { %646 = vmatmul.msk.f32.vlgmr.msra.gmra.mxu1 %vm74_vm0, %v459_v33  ;;  %v461_v34 = vsel %vm195_vm3, %v459_v33, -inf }
 0x337   :  { %462 = vmax.xlane.f32.xlu2 %v461_v34 }
 0x399   :  { %v320_v35 = vpop.permute.xlu0 %319 }
 0x39a   :  { %323 = vst.msk [vmem:[#allocation10 + $0x10] sm:$0xff] %vm206_vm4, %v320_v35 }
 0x3a1   :  { %v367_v36 = vpop.xlane.xlu2 %366 }
 0x3a2   :  { %v416_v48 = vpop.permute.xlu0 %415 }
 0x3a3   :  { %v418_v49 = vsel %vm206_vm4, %v416_v48, 0.0 }
 0x3aa   :  { %v463_v37 = vpop.xlane.xlu2 %462 }
 0x3ab   :  { %v464_v38 = vsub.f32 %v459_v33, %v463_v37 }
 0x3ad   :  { %v465_v39 = vmul.f32 1.442695, %v464_v38 }
 0x3af   :  { %675 = vpow2.f32 %v465_v39 }
 0x3b0   :  { %677 = vlog2.f32 %v367_v36 }
 0x3b3   :  { %v511_v41 = vpop.f32.mrf.mxu1 }
 0x3b4   :  { %v512_v42 = vadd.f32 %v511_v41, %v490_v40 }
 0x3b5   :  { %v676_v43 = vpop.eup %675 }
 0x3b6   :  { %647 = vmatmul.msk.f32.vlgmr.msra.gmra.mxu2 %vm74_vm0, %v512_v42  ;;  %468 = vrot.lane.b32.xlu0 %v676_v43, %s824_s4  ;;  %v514_v44 = vsel %vm195_vm3, %v512_v42, -inf  ;;  %v678_v45 = vpop.eup %677 }
 0x3b7   :  { %515 = vmax.xlane.f32.xlu2 %v514_v44  ;;  %v369_v46 = vmul.f32 0.6931472, %v678_v45 }
 0x3b9   :  { %v370_v47 = vsub.f32 %v358_v17, %v369_v46 }
 0x3cf   :  { %372 = vrot.lane.b32.xlu2 %v370_v47, %s824_s4 }
 0x3f8   :  { %419 = vadd.xlane.f32.xlu2 %v418_v49 }
 0x428   :  { %v469_v63 = vpop.permute.xlu0 %468 }
 0x429   :  { %v471_v0 = vsel %vm206_vm4, %v469_v63, 0.0 }
 0x42a   :  { %v516_v50 = vpop.xlane.xlu2 %515 }
 0x42b   :  { %v517_v51 = vsub.f32 %v512_v42, %v516_v50 }
 0x42d   :  { %v518_v52 = vmul.f32 1.442695, %v517_v51 }
 0x42f   :  { %679 = vpow2.f32 %v518_v52 }
 0x432   :  { %v373_v53 = vpop.permute.xlu2 %372 }
 0x433   :  { %376 = vst.msk [vmem:[#allocation10 + $0x18] sm:$0xff] %vm206_vm4, %v373_v53 }
 0x435   :  { %v680_v54 = vpop.eup %679 }
 0x436   :  { %521 = vrot.lane.b32.xlu0 %v680_v54, %s824_s4 }
 0x439   :  { %v564_v56 = vpop.f32.mrf.mxu2 }
 0x43a   :  { %v565_v57 = vadd.f32 %v564_v56, %v543_v55 }
 0x43c   :  { %595 = vst.msk [vmem:[#allocation2] sm:$0xff] %vm74_vm0, %v565_v57  ;;  %v567_v58 = vsel %vm195_vm3, %v565_v57, -inf }
 0x43d   :  { %594 = vst.msk [vmem:[#allocation11] sm:$0xff] %vm74_vm0, %v565_v57  ;;  %568 = vmax.xlane.f32.xlu1 %v567_v58 }
 0x43e   :  { %619 = dma.vmem_to_hbm [thread:$0]  %s615_s17, 128, %s617_s20, [#allocation12]  }
 0x46b   :  { %v420_v59 = vpop.xlane.xlu2 %419 }
 0x46c   :  { %681 = vlog2.f32 %v420_v59 }
 0x472   :  { %v682_v60 = vpop.eup %681 }
 0x473   :  { %v422_v61 = vmul.f32 0.6931472, %v682_v60 }
 0x475   :  { %v423_v62 = vsub.f32 %v411_v25, %v422_v61 }
 0x477   :  { %425 = vrot.lane.b32.xlu1 %v423_v62, %s824_s4 }
 0x4a1   :  { %472 = vadd.xlane.f32.xlu1 %v471_v0 }
 0x4a8   :  { %v522_v1 = vpop.permute.xlu0 %521 }
 0x4a9   :  { %v524_v2 = vsel %vm206_vm4, %v522_v1, 0.0 }
 0x4aa   :  { %525 = vadd.xlane.f32.xlu2 %v524_v2 }
 0x4b0   :  { %v569_v3 = vpop.xlane.xlu1 %568 }
 0x4b1   :  { %v570_v4 = vsub.f32 %v565_v57, %v569_v3 }
 0x4b3   :  { %v571_v5 = vmul.f32 1.442695, %v570_v4 }
 0x4b5   :  { %683 = vpow2.f32 %v571_v5 }
 0x4bb   :  { %v684_v6 = vpop.eup %683 }
 0x4bc   :  { %574 = vrot.lane.b32.xlu0 %v684_v6, %s824_s4 }
 0x4e9   :  { %v426_v7 = vpop.permute.xlu1 %425 }
 0x4ea   :  { %429 = vst.msk [vmem:[#allocation10 + $0x20] sm:$0xff] %vm206_vm4, %v426_v7 }
 0x514   :  { %v473_v8 = vpop.xlane.xlu1 %472 }
 0x515   :  { %685 = vlog2.f32 %v473_v8 }
 0x51b   :  { %v686_v9 = vpop.eup %685 }
 0x51c   :  { %v475_v10 = vmul.f32 0.6931472, %v686_v9 }
 0x51d   :  { %v526_v12 = vpop.xlane.xlu2 %525 }
 0x51e   :  { %v476_v13 = vsub.f32 %v464_v38, %v475_v10  ;;  %687 = vlog2.f32 %v526_v12 }
 0x520   :  { %478 = vrot.lane.b32.xlu0 %v476_v13, %s824_s4 }
 0x524   :  { %v688_v14 = vpop.eup %687 }
 0x525   :  { %v528_v15 = vmul.f32 0.6931472, %v688_v14 }
 0x527   :  { %v529_v16 = vsub.f32 %v517_v51, %v528_v15 }
 0x529   :  { %531 = vrot.lane.b32.xlu2 %v529_v16, %s824_s4 }
 0x52e   :  { %v575_v17 = vpop.permute.xlu0 %574 }
 0x52f   :  { %v577_v18 = vsel %vm206_vm4, %v575_v17, 0.0 }
 0x54a   :  { %578 = vadd.xlane.f32.xlu0 %v577_v18 }
 0x583   :  { %v532_v19 = vpop.permute.xlu2 %531 }
 0x584   :  { %535 = vst.msk [vmem:[#allocation10 + $0x30] sm:$0xff] %vm206_vm4, %v532_v19 }
 0x592   :  { %v479_v11 = vpop.permute.xlu0 %478 }
 0x593   :  { %482 = vst.msk [vmem:[#allocation10 + $0x28] sm:$0xff] %vm206_vm4, %v479_v11 }
 0x5bd   :  { %v579_v20 = vpop.xlane.xlu0 %578 }
 0x5be   :  { %689 = vlog2.f32 %v579_v20 }
 0x5c4   :  { %v690_v21 = vpop.eup %689 }
 0x5c5   :  { %v581_v22 = vmul.f32 0.6931472, %v690_v21 }
 0x5c7   :  { %v582_v23 = vsub.f32 %v570_v4, %v581_v22 }
 0x5c9   :  { %584 = vrot.lane.b32.xlu2 %v582_v23, %s824_s4 }
 0x623   :  { %v585_v24 = vpop.permute.xlu2 %584 }
 0x624   :  { %588 = vst.msk [vmem:[#allocation10 + $0x38] sm:$0xff] %vm206_vm4, %v585_v24 }
 0x625   :  { %608 = dma.vmem_to_hbm [thread:$0]  %s601_s22, 1024, %s603_s25, [#allocation6], %s821_s7, %s821_s7, %s822_s8  }
 0x626   :  { %815 = dma.done.wait [#allocation6], 1024  }
 0x627   :  { %816 = vsyncadd [#allocation6], 4294966272 }
 0x628   :  { %817 = dma.done.wait [#allocation12], 128  }
 0x629   :  { %818 = vsyncadd [#allocation12], 4294967168 }
 0x62a   :  { %628 = vsyncpa [#allocation5], 1 }
 0x62b   :  { %629 = vsyncpa [#allocation8], 1 }
 0x62c   :  { %630 = vsyncpa [#allocation6], 1 }
 0x62d   :  { %631 = vsyncpa [#allocation12], 1 }

</bundles_post_ra>
